<compile_context>
chip_gen: v5e
topology: v5e:2x2
jax: 0.10.0
libtpu: 0.0.40
codegen_flags: <defaults>
</compile_context>

<pallas_src>
import jax
import jax.numpy as jnp
from jax.experimental import pallas as pl
from jax.experimental.pallas import tpu as pltpu


# ----------------------------------------------------------------------------
# Fused (Linear -> ReLU -> Linear -> ReLU) Pallas kernel
# ----------------------------------------------------------------------------
def _fused_mlp_relu_kernel(x_ref, w1_ref, b1_ref, w2_ref, b2_ref, o_ref):
    # x_ref : (tm, K)   w1_ref: (K, H)   b1_ref: (1, H)
    # w2_ref: (H, N)    b2_ref: (1, N)   o_ref : (tm, N)
    #
    # Layer 1: intermediate h lives entirely in VMEM/vregs (no HBM round-trip).
    h = jnp.dot(x_ref[...], w1_ref[...], preferred_element_type=jnp.float32)
    h = jnp.maximum(h + b1_ref[...], 0.0)          # f32 bias + ReLU epilogue

    # Layer 2 (cast h to the weight dtype; no-op when everything is f32).
    y = jnp.dot(h.astype(w2_ref.dtype), w2_ref[...],
                preferred_element_type=jnp.float32)
    o_ref[...] = jnp.maximum(y + b2_ref[...], 0.0).astype(o_ref.dtype)


def fused_mlp_relu(x, w1, b1, w2, b2, *, block_m=512, use_bf16=False,
                   single_buffer_weights=False):
    """y = relu(relu(x @ w1 + b1) @ w2 + b2), fused in a single pallas_call."""
    M, K = x.shape
    Kw1, H = w1.shape
    Hw2, N = w2.shape
    assert K == Kw1 and H == Hw2 and b1.shape == (H,) and b2.shape == (N,)
    assert block_m % 8 == 0

    # --- batch tiling: one full block for small M, block_m-row tiles plus a
    # --- ragged (Pallas-clipped) last block otherwise.  No host-side padding.
    tm = M if M <= block_m else block_m
    num_tiles = pl.cdiv(M, tm)

    # Shard the batch axis across TensorCores as soon as there are >= 2 tiles
    # (uses both v7x cores; measured no-op on single-core v5e/v6e).
    dim_sem = ("parallel",) if num_tiles >= 2 else ("arbitrary",)

    # --- optional bf16 matmul inputs (f32 accumulate); epilogue stays f32 ---
    mm_dtype = jnp.bfloat16 if use_bf16 else x.dtype
    out_dtype = x.dtype
    x_c = x.astype(mm_dtype)
    w1_c = w1.astype(mm_dtype)
    w2_c = w2.astype(mm_dtype)
    b1_2d = b1.reshape(1, H).astype(jnp.float32)
    b2_2d = b2.reshape(1, N).astype(jnp.float32)

    def _const_spec(shape):
        # Constant-index_map blocks: double-buffering them is pure VMEM waste.
        # Only meaningful at production H/N on v7x (64 MiB VMEM); opt-in.
        if single_buffer_weights and num_tiles > 1:
            return pl.BlockSpec(shape, lambda i: (0, 0),
                                pipeline_mode=pl.Buffered(1))
        return pl.BlockSpec(shape, lambda i: (0, 0))

    # --- explicit VMEM budget (headroom under v7x's 64 MiB physical VMEM) ---
    itm = jnp.dtype(mm_dtype).itemsize
    oit = jnp.dtype(out_dtype).itemsize
    wbuf = 1 if (single_buffer_weights and num_tiles > 1) else 2
    vmem_need = (2 * tm * K * itm                     # x tiles (double-buffered)
                 + 2 * tm * N * oit                   # out tiles (double-buffered)
                 + wbuf * (K * H + H * N) * itm       # weights
                 + wbuf * (H + N) * 4                 # biases (f32)
                 + tm * H * 4)                        # intermediate h (f32)
    vmem_limit = int(min(48 * 2**20, max(32 * 2**20, 2 * vmem_need)))

    flops = 2 * M * K * H + 2 * M * H * N
    bytes_accessed = int(x_c.size * itm + (w1_c.size + w2_c.size) * itm
                         + (b1_2d.size + b2_2d.size) * 4 + M * N * oit)

    return pl.pallas_call(
        _fused_mlp_relu_kernel,
        out_shape=jax.ShapeDtypeStruct((M, N), out_dtype),
        grid_spec=pltpu.PrefetchScalarGridSpec(
            num_scalar_prefetch=0,
            grid=(num_tiles,),
            in_specs=[
                pl.BlockSpec((tm, K), lambda i: (i, 0)),   # batch tile of x
                _const_spec((K, H)),                       # full w1
                _const_spec((1, H)),                       # bias 1
                _const_spec((H, N)),                       # full w2
                _const_spec((1, N)),                       # bias 2
            ],
            out_specs=pl.BlockSpec((tm, N), lambda i: (i, 0)),
        ),
        compiler_params=pltpu.CompilerParams(
            dimension_semantics=dim_sem,
            vmem_limit_bytes=vmem_limit,
        ),
        cost_estimate=pl.CostEstimate(
            flops=flops, transcendentals=0, bytes_accessed=bytes_accessed),
    )(x_c, w1_c, b1_2d, w2_c, b2_2d)


# ----------------------------------------------------------------------------
# JAX analogue of the PyTorch InductorModule wrapper
# ----------------------------------------------------------------------------
class InductorModule:
    """Wrapper module for a compiled function: forward(*a, **kw) = func(*a, **kw)."""

    def __init__(self, func):
        self.func = func

    def __call__(self, *args, **kwargs):
        return self.func(*args, **kwargs)


# ----------------------------------------------------------------------------
# Deterministic parameter init (torch.nn.Linear-style uniform(-1/sqrt(in), ..))
# ----------------------------------------------------------------------------
def init_linear(key, d_in, d_out):
    kw, kb = jax.random.split(key)
    bound = 1.0 / jnp.sqrt(jnp.float32(d_in))
    w = jax.random.uniform(kw, (d_in, d_out), jnp.float32, -bound, bound)
    b = jax.random.uniform(kb, (d_out,), jnp.float32, -bound, bound)
    return w, b


def make_compiled_func(w1, b1, w2, b2, **opts):
    """The 'inductor-compiled' partition: linear1 -> relu -> linear2 -> relu,
    executed as one fused Pallas kernel (intermediate kept in VMEM)."""

    @jax.jit
    def func(x):
        # For production sizes pass use_bf16=True (halves HBM bytes on the
        # dominant x/w streams; f32 accumulate + f32 epilogue stays v5e-safe).
        # Kept f32 here so the 1e-5 reference check holds.
        return fused_mlp_relu(x, w1, b1, w2, b2, **opts)

    return func


if __name__ == "__main__":
    key = jax.random.PRNGKey(0)
    kx, k1, k2, kx2 = jax.random.split(key, 4)

    # Small shapes: batch=16, d_in=32, hidden=128, d_out=32
    B, D_IN, D_HID, D_OUT = 16, 32, 128, 32
    x = jax.random.normal(kx, (B, D_IN), jnp.float32)
    w1, b1 = init_linear(k1, D_IN, D_HID)
    w2, b2 = init_linear(k2, D_HID, D_OUT)

    def ref_fn(xx):
        return jnp.maximum(jnp.maximum(xx @ w1 + b1, 0.0) @ w2 + b2, 0.0)

    # --- single-tile (launch-bound) path -----------------------------------
    module = InductorModule(make_compiled_func(w1, b1, w2, b2))
    out = jax.block_until_ready(module(x))
    assert out.shape == (B, D_OUT)
    assert jnp.allclose(out, ref_fn(x), atol=1e-5, rtol=1e-5)

    # --- multi-tile path: ragged last block, "parallel" grid sharding -------
    # 72 rows with 32-row tiles -> grid=(3,), last block partially filled.
    M2 = 72
    x2 = jax.random.normal(kx2, (M2, D_IN), jnp.float32)
    module_tiled = InductorModule(make_compiled_func(w1, b1, w2, b2, block_m=32))
    out2 = jax.block_until_ready(module_tiled(x2))
    assert out2.shape == (M2, D_OUT)
    assert jnp.allclose(out2, ref_fn(x2), atol=1e-5, rtol=1e-5)

    print("KERNEL_OK")
</pallas_src>

<mosaic_0001>
module attributes {stable_mosaic.version = 11 : i64} {
  func.func @_fused_mlp_relu_kernel(%arg0: i32, %arg1: memref<16x32xf32, #tpu.memory_space<vmem>>, %arg2: memref<32x128xf32, #tpu.memory_space<vmem>>, %arg3: memref<1x128xf32, #tpu.memory_space<vmem>>, %arg4: memref<128x32xf32, #tpu.memory_space<vmem>>, %arg5: memref<1x32xf32, #tpu.memory_space<vmem>>, %arg6: memref<16x32xf32, #tpu.memory_space<vmem>>) attributes {dimension_semantics = [#tpu.dimension_semantics<arbitrary>], iteration_bounds = array<i64: 1>, scalar_prefetch = 0 : i64, scratch_operands = 0 : i64, tpu.core_type = #tpu.core_type<tc>, window_params = [{transform_indices = @transform_0, window_bounds = array<i64: 16, 32>}, {pipeline_mode = #tpu.pipeline_mode<synchronous>, transform_indices = @transform_1, window_bounds = array<i64: 32, 128>}, {pipeline_mode = #tpu.pipeline_mode<synchronous>, transform_indices = @transform_2, window_bounds = array<i64: 1, 128>}, {pipeline_mode = #tpu.pipeline_mode<synchronous>, transform_indices = @transform_3, window_bounds = array<i64: 128, 32>}, {pipeline_mode = #tpu.pipeline_mode<synchronous>, transform_indices = @transform_4, window_bounds = array<i64: 1, 32>}, {transform_indices = @transform_5, window_bounds = array<i64: 16, 32>}]} {
    %c0 = arith.constant 0 : index
    %c0_0 = arith.constant 0 : index
    %0 = vector.load %arg1[%c0, %c0_0] : memref<16x32xf32, #tpu.memory_space<vmem>>, vector<16x32xf32>
    %c0_1 = arith.constant 0 : index
    %c0_2 = arith.constant 0 : index
    %1 = vector.load %arg2[%c0_1, %c0_2] : memref<32x128xf32, #tpu.memory_space<vmem>>, vector<32x128xf32>
    %cst = arith.constant dense<0.000000e+00> : vector<16x128xf32>
    %2 = tpu.matmul %0, %1, %cst {dimension_numbers = #tpu.dot_dimension_numbers<[1], [0], [0], [1], [0, 0, 1, 1], [], []>} : vector<16x32xf32>, vector<32x128xf32>, vector<16x128xf32> -> vector<16x128xf32>
    %c0_3 = arith.constant 0 : index
    %c0_4 = arith.constant 0 : index
    %3 = vector.load %arg3[%c0_3, %c0_4] : memref<1x128xf32, #tpu.memory_space<vmem>>, vector<1x128xf32>
    %4 = vector.broadcast %3 : vector<1x128xf32> to vector<16x128xf32>
    %5 = arith.addf %2, %4 : vector<16x128xf32>
    %cst_5 = arith.constant 0.000000e+00 : f32
    %6 = vector.broadcast %cst_5 : f32 to vector<16x128xf32>
    %7 = arith.maximumf %5, %6 : vector<16x128xf32>
    %c0_6 = arith.constant 0 : index
    %c0_7 = arith.constant 0 : index
    %8 = vector.load %arg4[%c0_6, %c0_7] : memref<128x32xf32, #tpu.memory_space<vmem>>, vector<128x32xf32>
    %cst_8 = arith.constant dense<0.000000e+00> : vector<16x32xf32>
    %9 = tpu.matmul %7, %8, %cst_8 {dimension_numbers = #tpu.dot_dimension_numbers<[1], [0], [0], [1], [0, 0, 1, 1], [], []>} : vector<16x128xf32>, vector<128x32xf32>, vector<16x32xf32> -> vector<16x32xf32>
    %c0_9 = arith.constant 0 : index
    %c0_10 = arith.constant 0 : index
    %10 = vector.load %arg5[%c0_9, %c0_10] : memref<1x32xf32, #tpu.memory_space<vmem>>, vector<1x32xf32>
    %11 = vector.broadcast %10 : vector<1x32xf32> to vector<16x32xf32>
    %12 = arith.addf %9, %11 : vector<16x32xf32>
    %cst_11 = arith.constant 0.000000e+00 : f32
    %13 = vector.broadcast %cst_11 : f32 to vector<16x32xf32>
    %14 = arith.maximumf %12, %13 : vector<16x32xf32>
    %c0_12 = arith.constant 0 : index
    %c0_13 = arith.constant 0 : index
    %15 = vector.load %arg6[%c0_12, %c0_13] : memref<16x32xf32, #tpu.memory_space<vmem>>, vector<16x32xf32>
    tpu.vector_store %arg6[%c0_12, %c0_13], %14 {strides = array<i32>} : memref<16x32xf32, #tpu.memory_space<vmem>>, vector<16x32xf32>,
    return
  }
  func.func @transform_0(%arg0: i32) -> (i32, i32) {
    %c0_i32 = arith.constant 0 : i32
    %c0_i32_0 = arith.constant 0 : i32
    return %arg0, %c0_i32 : i32, i32
  }
  func.func @transform_1(%arg0: i32) -> (i32, i32) {
    %c0_i32 = arith.constant 0 : i32
    %c0_i32_0 = arith.constant 0 : i32
    %c0_i32_1 = arith.constant 0 : i32
    return %c0_i32, %c0_i32_0 : i32, i32
  }
  func.func @transform_2(%arg0: i32) -> (i32, i32) {
    %c0_i32 = arith.constant 0 : i32
    %c0_i32_0 = arith.constant 0 : i32
    %c0_i32_1 = arith.constant 0 : i32
    return %c0_i32, %c0_i32_0 : i32, i32
  }
  func.func @transform_3(%arg0: i32) -> (i32, i32) {
    %c0_i32 = arith.constant 0 : i32
    %c0_i32_0 = arith.constant 0 : i32
    %c0_i32_1 = arith.constant 0 : i32
    return %c0_i32, %c0_i32_0 : i32, i32
  }
  func.func @transform_4(%arg0: i32) -> (i32, i32) {
    %c0_i32 = arith.constant 0 : i32
    %c0_i32_0 = arith.constant 0 : i32
    %c0_i32_1 = arith.constant 0 : i32
    return %c0_i32, %c0_i32_0 : i32, i32
  }
  func.func @transform_5(%arg0: i32) -> (i32, i32) {
    %c0_i32 = arith.constant 0 : i32
    %c0_i32_0 = arith.constant 0 : i32
    return %arg0, %c0_i32 : i32, i32
  }
}

</mosaic_0001>

<bundles_post_ra>
// kernel: func.1
= control target key start
LH: loop header
LB: loop body
LE: loop exit
PB: predicated region body
PF: predicated region fallthrough
CT: control target
= control target key end

     0   :  { %10 = vsyncpa [#allocation3], 0  ;;  %s375_s0 = inlined_call_operand.hbm [shape: f32[16,32], index: 0, kind: input, shape index: {}]   ;;  %s376_s1 = inlined_call_operand.hbm [shape: f32[32,128], index: 1, kind: input, shape index: {}]   ;;  %s377_s2 = inlined_call_operand.vmem [shape: f32[1,128], index: 2, kind: input, shape index: {}]   ;;  %s378_s3 = inlined_call_operand.hbm [shape: f32[128,32], index: 3, kind: input, shape index: {}]   ;;  %s379_s4 = inlined_call_operand.vmem [shape: f32[1,32], index: 4, kind: input, shape index: {}]   ;;  %s380_s5 = inlined_call_operand.hbm [shape: f32[16,32], index: 5, kind: output, shape index: {}]  }
   0x1   :  { %11 = vsyncpa [#allocation6], 0 }
   0x2   :  { %12 = vsyncpa [#allocation4], 0  ;;  %s30_s20 = sshll.u32 %s376_s1, 4  ;;  %s305_s21 = smov [#allocation5]   ;;  %s31_s20 = int_to_ptr.hbm [resolvable:$true] %s30_s20 }
   0x3   :  { %s32_s22 = sshll.u32 %s305_s21, 4  ;;  %s17_s25 = sshll.u32 %s375_s0, 4  ;;  %s33_s22 = int_to_ptr.vmem [resolvable:$true] %s32_s22  ;;  %s18_s25 = int_to_ptr.hbm [resolvable:$true] %s17_s25 }
   0x4   :  { %s306_s26 = smov 128   ;;  %s307_s27 = smov 8  }
   0x5   :  { %38 = dma.hbm_to_vmem [thread:$0]  %s31_s20, 512, %s33_s22, [#allocation6], %s306_s26, %s306_s26, %s307_s27  }
   0x6   :  { %s308_s28 = smov [#allocation2]   ;;  %s45_s1 = sshll.u32 %s378_s3, 4  ;;  %s46_s1 = int_to_ptr.hbm [resolvable:$true] %s45_s1 }
   0x7   :  { %s19_s29 = sshll.u32 %s308_s28, 4  ;;  %s309_s0 = smov [#allocation7]   ;;  %s20_s29 = int_to_ptr.vmem [resolvable:$true] %s19_s29 }
   0x8   :  { %25 = dma.hbm_to_vmem [thread:$0]  %s18_s25, 256, %s20_s29, [#allocation3], %s306_s26, %s306_s26, %s307_s27  }
   0x9   :  { %s47_s7 = sshll.u32 %s309_s0, 4  ;;  %s48_s7 = int_to_ptr.vmem [resolvable:$true] %s47_s7 }
   0xa   :  { %53 = dma.hbm_to_vmem [thread:$0]  %s46_s1, 2048, %s48_s7, [#allocation6], %s306_s26, %s306_s26, %s307_s27  }
   0xb   :  { %299 = dma.done.wait [#allocation3], 256  }
   0xc   :  { %300 = vsyncadd [#allocation3], 4294967040 }
   0xd   :  { %301 = dma.done.wait [#allocation6], 2560  }
   0xe   :  { %302 = vsyncadd [#allocation6], 4294964736  ;;  %v73_v0 = vld [vmem:[#allocation5 + $0x18] sm:$0xff]  ;;  %v72_v1 = vld [vmem:[#allocation5 + $0x10] sm:$0xff]  ;;  %vm78_vm0 = vcmask 261120   ;;  %s310_s11 = smov [#allocation8]  }
   0xf   :  { %97 = vmatpush.msra.mxu0 %v73_v0  ;;  %v71_v2 = vld [vmem:[#allocation5 + $0x8] sm:$0xff]  ;;  %v125_v3 = vld [vmem:[#allocation7 + $0x78] sm:$0xff]  ;;  %v124_v4 = vld [vmem:[#allocation7 + $0x70] sm:$0xff]  ;;  %s163_s14 = sshll.u32 %s380_s5, 4  ;;  %s164_s14 = int_to_ptr.hbm [resolvable:$true] %s163_s14 }
  0x10   :  { %130 = vmatpush.msra.mxu1 %v125_v3  ;;  %v70_v5 = vld [vmem:[#allocation5] sm:$0xff]  ;;  %v123_v6 = vld [vmem:[#allocation7 + $0x68] sm:$0xff]  ;;  %179 = vmatpush.msra.mxu2 %v125_v3  ;;  %v68_v7 = vld [vmem:[#allocation2] sm:$0xff] }
  0x11   :  { %98 = vmatpush.msra.mxu0 %v72_v1  ;;  %v122_v8 = vld [vmem:[#allocation7 + $0x60] sm:$0xff]  ;;  %v121_v9 = vld [vmem:[#allocation7 + $0x58] sm:$0xff]  ;;  %v120_v10 = vld [vmem:[#allocation7 + $0x50] sm:$0xff] }
  0x12   :  { %131 = vmatpush.msra.mxu1 %v124_v4  ;;  %180 = vmatpush.msra.mxu2 %v124_v4  ;;  %v119_v11 = vld [vmem:[#allocation7 + $0x48] sm:$0xff]  ;;  %v69_v12 = vld [vmem:[#allocation2 + $0x8] sm:$0xff]  ;;  %v118_v13 = vld [vmem:[#allocation7 + $0x40] sm:$0xff] }
  0x13   :  { %99 = vmatpush.msra.mxu0 %v71_v2  ;;  %v117_v14 = vld [vmem:[#allocation7 + $0x38] sm:$0xff]  ;;  %v116_v15 = vld [vmem:[#allocation7 + $0x30] sm:$0xff]  ;;  %v115_v16 = vld [vmem:[#allocation7 + $0x28] sm:$0xff] }
  0x14   :  { %132 = vmatpush.msra.mxu1 %v123_v6  ;;  %181 = vmatpush.msra.mxu2 %v123_v6  ;;  %v114_v17 = vld [vmem:[#allocation7 + $0x20] sm:$0xff]  ;;  %v113_v18 = vld [vmem:[#allocation7 + $0x18] sm:$0xff]  ;;  %v112_v19 = vld [vmem:[#allocation7 + $0x10] sm:$0xff] }
  0x15   :  { %100 = vmatpush.msra.mxu0 %v70_v5  ;;  %v111_v20 = vld [vmem:[#allocation7 + $0x8] sm:$0xff]  ;;  %v110_v21 = vld [vmem:[#allocation7] sm:$0xff]  ;;  %v201_v22 = vld [vmem:[%s377_s2] ss:$0 sm:$0xff]  ;;  %s161_s2 = sshll.u32 %s310_s11, 4  ;;  %s162_s2 = int_to_ptr.vmem [resolvable:$true] %s161_s2 }
  0x16   :  { %177 = vmatmul.msk.f32.vlgmr.msra.gmra.mxu0 %vm78_vm0, %v68_v7  ;;  %133 = vmatpush.msra.mxu1 %v122_v8  ;;  %v202_v29 = vld [vmem:[%s379_s4] ss:$0 sm:$0xff] }
  0x17   :  { %182 = vmatpush.msra.mxu2 %v122_v8 }
  0x18   :  { %134 = vmatpush.msra.mxu1 %v121_v9 }
  0x19   :  { %183 = vmatpush.msra.mxu2 %v121_v9 }
  0x1a   :  { %135 = vmatpush.msra.mxu1 %v120_v10 }
  0x1b   :  { %184 = vmatpush.msra.mxu2 %v120_v10 }
  0x1c   :  { %136 = vmatpush.msra.mxu1 %v119_v11 }
  0x1d   :  { %185 = vmatpush.msra.mxu2 %v119_v11 }
  0x1e   :  { %178 = vmatmul.msk.f32.gmra.mxu0 %vm78_vm0, %v69_v12  ;;  %137 = vmatpush.msra.mxu1 %v118_v13 }
  0x1f   :  { %186 = vmatpush.msra.mxu2 %v118_v13 }
  0x20   :  { %138 = vmatpush.msra.mxu1 %v117_v14 }
  0x21   :  { %187 = vmatpush.msra.mxu2 %v117_v14 }
  0x22   :  { %139 = vmatpush.msra.mxu1 %v116_v15 }
  0x23   :  { %188 = vmatpush.msra.mxu2 %v116_v15 }
  0x24   :  { %140 = vmatpush.msra.mxu1 %v115_v16 }
  0x25   :  { %189 = vmatpush.msra.mxu2 %v115_v16 }
  0x26   :  { %141 = vmatpush.msra.mxu1 %v114_v17 }
  0x27   :  { %190 = vmatpush.msra.mxu2 %v114_v17 }
  0x28   :  { %142 = vmatpush.msra.mxu1 %v113_v18 }
  0x29   :  { %191 = vmatpush.msra.mxu2 %v113_v18 }
  0x2a   :  { %143 = vmatpush.msra.mxu1 %v112_v19 }
  0x2b   :  { %192 = vmatpush.msra.mxu2 %v112_v19 }
  0x2c   :  { %144 = vmatpush.msra.mxu1 %v111_v20 }
  0x2d   :  { %193 = vmatpush.msra.mxu2 %v111_v20 }
  0x2e   :  { %145 = vmatpush.msra.mxu1 %v110_v21 }
  0x2f   :  { %194 = vmatpush.msra.mxu2 %v110_v21 }
  0x93   :  { %v102_v23 = vpop.f32.mrf.mxu0 }
  0x94   :  { %v103_v24 = vadd.f32 %v201_v22, %v102_v23 }
  0x96   :  { %v108_v25 = vmax.f32 %v103_v24, 0.0 }
  0x98   :  { %146 = vmatmul.f32.vlgmr.msra.gmra.mxu1 %v108_v25 }
  0x9b   :  { %v105_v26 = vpop.f32.mrf.mxu0 }
  0x9c   :  { %v106_v27 = vadd.f32 %v201_v22, %v105_v26 }
  0x9e   :  { %v109_v28 = vmax.f32 %v106_v27, 0.0 }
  0xa0   :  { %149 = vmatmul.f32.vlgmr.msra.gmra.mxu2 %v109_v28 }
 0x115   :  { %v147_v30 = vpop.f32.mrf.mxu1 }
 0x116   :  { %v148_v31 = vadd.f32 %v202_v29, %v147_v30 }
 0x118   :  { %v153_v32 = vmax.f32 %v148_v31, 0.0 }
 0x11a   :  { %155 = vst.msk [vmem:[#allocation8] sm:$0xff] %vm78_vm0, %v153_v32 }
 0x123   :  { %v150_v33 = vpop.f32.mrf.mxu2 }
 0x124   :  { %v151_v34 = vadd.f32 %v202_v29, %v150_v33 }
 0x126   :  { %v154_v35 = vmax.f32 %v151_v34, 0.0 }
 0x128   :  { %156 = vst.msk [vmem:[#allocation8 + $0x8] sm:$0xff] %vm78_vm0, %v154_v35 }
 0x129   :  { %169 = dma.vmem_to_hbm [thread:$0]  %s162_s2, 256, %s164_s14, [#allocation4], %s306_s26, %s306_s26, %s307_s27  }
 0x12a   :  { %303 = dma.done.wait [#allocation4], 256  }
 0x12b   :  { %304 = vsyncadd [#allocation4], 4294967040 }
 0x12c   :  { %174 = vsyncpa [#allocation3], 1 }
 0x12d   :  { %175 = vsyncpa [#allocation6], 1 }
 0x12e   :  { %176 = vsyncpa [#allocation4], 1 }

</bundles_post_ra>
